<compile_context>
chip_gen: v7x
topology: tpu7x:2x2x1
jax: 0.10.0
libtpu: 0.0.40
codegen_flags: <defaults>
</compile_context>

<pallas_src>
import jax
import jax.numpy as jnp
from jax.experimental import pallas as pl
from jax.experimental.pallas import tpu as pltpu

# ---- small synthetic config (mirrors the PyTorch module's shapes) ----
NUM_CLASS = 22          # config['num_class']
POSE_DIM  = 17 * 2      # pose_dim = 34
FEAT_CH   = 128         # stand-in feat_dim (EfficientNet-B3 would give 1536)
IN_CH     = 3
KSZ       = 3
H = W     = 16
BATCH     = 2

LANE      = 128
CKK       = IN_CH * KSZ * KSZ       # 27  (contraction dim of the im2col conv)
CKK_PAD   = LANE                    # pad K 27 -> 128 (lane/tile aligned)
POSE_PAD  = LANE                    # pad pose 34 -> 128
CLASS_PAD = LANE                    # pad classes 22 -> 128 (lane-dense store)


# ---------------- fused Pallas kernel ----------------

def fused_pose_classifier_kernel(patch_ref, wconv_ref, bconv_ref, pool_ref,
                                 pose_ref, wf_ref, wp_ref, bfc_ref, out_ref):
    """conv(im2col matmul) + bias + ReLU + MXU avg-pool + fc, all in one kernel.

    patch_ref: (N*HW, CKK_PAD)   wconv_ref: (CKK_PAD, F)    bconv_ref: (1, F)
    pool_ref : (N, N*HW)         pose_ref : (N, POSE_PAD)
    wf_ref   : (F, CLASS_PAD)    wp_ref   : (POSE_PAD, CLASS_PAD)
    bfc_ref  : (1, CLASS_PAD)    out_ref  : (N, CLASS_PAD)
    """
    # One batched conv matmul over all batch elements (M = N*HW).
    acc = jnp.dot(patch_ref[...], wconv_ref[...],
                  preferred_element_type=jnp.float32)             # (N*HW, F)
    acc = jnp.maximum(acc + bconv_ref[...], 0.0)                  # bias + ReLU

    # Global average pool routed through the MXU: block-diagonal (1/HW) ones.
    feat = jnp.dot(pool_ref[...], acc,
                   preferred_element_type=jnp.float32)            # (N, F)

    # nn.Dropout in eval mode is the identity (inference semantics).
    # fc(cat([feat, pose])) == feat @ Wf + pose @ Wp + b  (concat fused away).
    out_ref[...] = (
        jnp.dot(feat, wf_ref[...], preferred_element_type=jnp.float32)
        + jnp.dot(pose_ref[...], wp_ref[...], preferred_element_type=jnp.float32)
        + bfc_ref[...]
    )


# ---------------- JAX glue ----------------

def im2col_nchw(x, k):
    """x: (N, C, H, W) -> patches (N, H*W, C*k*k), padding=1, stride=1.

    Channel-major, then (di, dj) ordering -- matches conv weight
    (F, C, kH, kW).reshape(F, C*k*k)."""
    n, c, h, w = x.shape
    xp = jnp.pad(x, ((0, 0), (0, 0), (1, 1), (1, 1)))
    cols = [xp[:, :, di:di + h, dj:dj + w] for di in range(k) for dj in range(k)]
    patches = jnp.stack(cols, axis=2)              # (N, C, k*k, H, W)
    patches = patches.reshape(n, c * k * k, h * w)
    return patches.transpose(0, 2, 1)              # (N, H*W, C*k*k)


def pose_classifier_forward(params, x, pose):
    n = x.shape[0]
    hw = x.shape[2] * x.shape[3]

    # im2col, collapse the batch axis, zero-pad K to a full 128-lane tile.
    patches = im2col_nchw(x, KSZ).reshape(n * hw, CKK)              # (N*HW, 27)
    patches = jnp.pad(patches, ((0, 0), (0, CKK_PAD - CKK)))        # (N*HW, 128)

    w_conv = params["conv_w"].reshape(FEAT_CH, CKK).T               # (27, F)
    w_conv = jnp.pad(w_conv, ((0, CKK_PAD - CKK), (0, 0)))          # (128, F)
    b_conv = params["conv_b"].reshape(1, FEAT_CH)                   # (1, F)

    # Block-diagonal pooling matrix: feat[b] = mean over that batch's HW rows.
    pool_mat = jnp.kron(jnp.eye(n, dtype=jnp.float32),
                        jnp.full((1, hw), 1.0 / hw, jnp.float32))   # (N, N*HW)

    pose_pad = jnp.pad(pose, ((0, 0), (0, POSE_PAD - POSE_DIM)))    # (N, 128)

    wf = params["fc_w"][:, :FEAT_CH].T                              # (F, 22)
    wf = jnp.pad(wf, ((0, 0), (0, CLASS_PAD - NUM_CLASS)))          # (F, 128)
    wp = params["fc_w"][:, FEAT_CH:].T                              # (34, 22)
    wp = jnp.pad(wp, ((0, POSE_PAD - POSE_DIM),
                      (0, CLASS_PAD - NUM_CLASS)))                  # (128, 128)
    b_fc = jnp.pad(params["fc_b"].reshape(1, NUM_CLASS),
                   ((0, 0), (0, CLASS_PAD - NUM_CLASS)))            # (1, 128)

    logits_pad = pl.pallas_call(
        fused_pose_classifier_kernel,
        out_shape=jax.ShapeDtypeStruct((n, CLASS_PAD), jnp.float32),
        grid=(1,),
        in_specs=[
            pl.BlockSpec((n * hw, CKK_PAD), lambda i: (0, 0)),
            pl.BlockSpec((CKK_PAD, FEAT_CH), lambda i: (0, 0)),
            pl.BlockSpec((1, FEAT_CH), lambda i: (0, 0)),
            pl.BlockSpec((n, n * hw), lambda i: (0, 0)),
            pl.BlockSpec((n, POSE_PAD), lambda i: (0, 0)),
            pl.BlockSpec((FEAT_CH, CLASS_PAD), lambda i: (0, 0)),
            pl.BlockSpec((POSE_PAD, CLASS_PAD), lambda i: (0, 0)),
            pl.BlockSpec((1, CLASS_PAD), lambda i: (0, 0)),
        ],
        out_specs=pl.BlockSpec((n, CLASS_PAD), lambda i: (0, 0)),
        compiler_params=pltpu.CompilerParams(
            dimension_semantics=("arbitrary",)),
    )(patches, w_conv, b_conv, pool_mat, pose_pad, wf, wp, b_fc)

    # Slice the zero-padded class axis back to the real 22 logits.
    return logits_pad[:, :NUM_CLASS]


def reference_forward(params, x, pose):
    """Pure-JAX reference of the same forward (for a correctness check)."""
    ckk = x.shape[1] * KSZ * KSZ
    patches = im2col_nchw(x, KSZ)
    w_conv = params["conv_w"].reshape(FEAT_CH, ckk).T
    conv = patches @ w_conv + params["conv_b"][None, None, :]
    conv = jnp.maximum(conv, 0.0)
    f = jnp.mean(conv, axis=1)                                  # (N, F)
    cat = jnp.concatenate([f, pose], axis=1)                    # (N, F + P)
    return cat @ params["fc_w"].T + params["fc_b"][None, :]


def init_params(key):
    k1, k2, k3, k4 = jax.random.split(key, 4)
    return {
        "conv_w": 0.05 * jax.random.normal(k1, (FEAT_CH, IN_CH, KSZ, KSZ), jnp.float32),
        "conv_b": 0.01 * jax.random.normal(k2, (FEAT_CH,), jnp.float32),
        "fc_w":   0.05 * jax.random.normal(k3, (NUM_CLASS, FEAT_CH + POSE_DIM), jnp.float32),
        "fc_b":   0.01 * jax.random.normal(k4, (NUM_CLASS,), jnp.float32),
    }


if __name__ == "__main__":
    key = jax.random.PRNGKey(0)
    kp, kx, kpose = jax.random.split(key, 3)

    params = init_params(kp)
    x = jax.random.normal(kx, (BATCH, IN_CH, H, W), jnp.float32)       # NCHW
    pose = jax.random.normal(kpose, (BATCH, POSE_DIM), jnp.float32)

    logits = jax.jit(pose_classifier_forward)(params, x, pose)
    jax.block_until_ready(logits)

    ref = reference_forward(params, x, pose)
    assert logits.shape == (BATCH, NUM_CLASS)
    assert jnp.allclose(logits, ref, atol=1e-4, rtol=1e-4)

    print("KERNEL_OK")
</pallas_src>

<mosaic_0001>
module attributes {stable_mosaic.version = 11 : i64} {
  func.func @fused_pose_classifier_kernel(%arg0: i32, %arg1: memref<512x128xf32, #tpu.memory_space<vmem>>, %arg2: memref<128x128xf32, #tpu.memory_space<vmem>>, %arg3: memref<1x128xf32, #tpu.memory_space<vmem>>, %arg4: memref<2x512xf32, #tpu.memory_space<vmem>>, %arg5: memref<2x128xf32, #tpu.memory_space<vmem>>, %arg6: memref<128x128xf32, #tpu.memory_space<vmem>>, %arg7: memref<128x128xf32, #tpu.memory_space<vmem>>, %arg8: memref<1x128xf32, #tpu.memory_space<vmem>>, %arg9: memref<2x128xf32, #tpu.memory_space<vmem>>) attributes {dimension_semantics = [#tpu.dimension_semantics<arbitrary>], iteration_bounds = array<i64: 1>, scalar_prefetch = 0 : i64, scratch_operands = 0 : i64, tpu.core_type = #tpu.core_type<tc>, window_params = [{pipeline_mode = #tpu.pipeline_mode<synchronous>, transform_indices = @transform_0, window_bounds = array<i64: 512, 128>}, {pipeline_mode = #tpu.pipeline_mode<synchronous>, transform_indices = @transform_1, window_bounds = array<i64: 128, 128>}, {pipeline_mode = #tpu.pipeline_mode<synchronous>, transform_indices = @transform_2, window_bounds = array<i64: 1, 128>}, {pipeline_mode = #tpu.pipeline_mode<synchronous>, transform_indices = @transform_3, window_bounds = array<i64: 2, 512>}, {pipeline_mode = #tpu.pipeline_mode<synchronous>, transform_indices = @transform_4, window_bounds = array<i64: 2, 128>}, {pipeline_mode = #tpu.pipeline_mode<synchronous>, transform_indices = @transform_5, window_bounds = array<i64: 128, 128>}, {pipeline_mode = #tpu.pipeline_mode<synchronous>, transform_indices = @transform_6, window_bounds = array<i64: 128, 128>}, {pipeline_mode = #tpu.pipeline_mode<synchronous>, transform_indices = @transform_7, window_bounds = array<i64: 1, 128>}, {pipeline_mode = #tpu.pipeline_mode<synchronous>, transform_indices = @transform_8, window_bounds = array<i64: 2, 128>}]} {
    %c0 = arith.constant 0 : index
    %c0_0 = arith.constant 0 : index
    %0 = vector.load %arg1[%c0, %c0_0] : memref<512x128xf32, #tpu.memory_space<vmem>>, vector<512x128xf32>
    %c0_1 = arith.constant 0 : index
    %c0_2 = arith.constant 0 : index
    %1 = vector.load %arg2[%c0_1, %c0_2] : memref<128x128xf32, #tpu.memory_space<vmem>>, vector<128x128xf32>
    %cst = arith.constant dense<0.000000e+00> : vector<512x128xf32>
    %2 = tpu.matmul %0, %1, %cst {dimension_numbers = #tpu.dot_dimension_numbers<[1], [0], [0], [1], [0, 0, 1, 1], [], []>} : vector<512x128xf32>, vector<128x128xf32>, vector<512x128xf32> -> vector<512x128xf32>
    %c0_3 = arith.constant 0 : index
    %c0_4 = arith.constant 0 : index
    %3 = vector.load %arg3[%c0_3, %c0_4] : memref<1x128xf32, #tpu.memory_space<vmem>>, vector<1x128xf32>
    %4 = vector.broadcast %3 : vector<1x128xf32> to vector<512x128xf32>
    %5 = arith.addf %2, %4 : vector<512x128xf32>
    %cst_5 = arith.constant 0.000000e+00 : f32
    %6 = vector.broadcast %cst_5 : f32 to vector<512x128xf32>
    %7 = arith.maximumf %5, %6 : vector<512x128xf32>
    %c0_6 = arith.constant 0 : index
    %c0_7 = arith.constant 0 : index
    %8 = vector.load %arg4[%c0_6, %c0_7] : memref<2x512xf32, #tpu.memory_space<vmem>>, vector<2x512xf32>
    %cst_8 = arith.constant dense<0.000000e+00> : vector<2x128xf32>
    %9 = tpu.matmul %8, %7, %cst_8 {dimension_numbers = #tpu.dot_dimension_numbers<[1], [0], [0], [1], [0, 0, 1, 1], [], []>} : vector<2x512xf32>, vector<512x128xf32>, vector<2x128xf32> -> vector<2x128xf32>
    %c0_9 = arith.constant 0 : index
    %c0_10 = arith.constant 0 : index
    %10 = vector.load %arg6[%c0_9, %c0_10] : memref<128x128xf32, #tpu.memory_space<vmem>>, vector<128x128xf32>
    %cst_11 = arith.constant dense<0.000000e+00> : vector<2x128xf32>
    %11 = tpu.matmul %9, %10, %cst_11 {dimension_numbers = #tpu.dot_dimension_numbers<[1], [0], [0], [1], [0, 0, 1, 1], [], []>} : vector<2x128xf32>, vector<128x128xf32>, vector<2x128xf32> -> vector<2x128xf32>
    %c0_12 = arith.constant 0 : index
    %c0_13 = arith.constant 0 : index
    %12 = vector.load %arg5[%c0_12, %c0_13] : memref<2x128xf32, #tpu.memory_space<vmem>>, vector<2x128xf32>
    %c0_14 = arith.constant 0 : index
    %c0_15 = arith.constant 0 : index
    %13 = vector.load %arg7[%c0_14, %c0_15] : memref<128x128xf32, #tpu.memory_space<vmem>>, vector<128x128xf32>
    %cst_16 = arith.constant dense<0.000000e+00> : vector<2x128xf32>
    %14 = tpu.matmul %12, %13, %cst_16 {dimension_numbers = #tpu.dot_dimension_numbers<[1], [0], [0], [1], [0, 0, 1, 1], [], []>} : vector<2x128xf32>, vector<128x128xf32>, vector<2x128xf32> -> vector<2x128xf32>
    %15 = arith.addf %11, %14 : vector<2x128xf32>
    %c0_17 = arith.constant 0 : index
    %c0_18 = arith.constant 0 : index
    %16 = vector.load %arg8[%c0_17, %c0_18] : memref<1x128xf32, #tpu.memory_space<vmem>>, vector<1x128xf32>
    %17 = vector.broadcast %16 : vector<1x128xf32> to vector<2x128xf32>
    %18 = arith.addf %15, %17 : vector<2x128xf32>
    %c0_19 = arith.constant 0 : index
    %c0_20 = arith.constant 0 : index
    %19 = vector.load %arg9[%c0_19, %c0_20] : memref<2x128xf32, #tpu.memory_space<vmem>>, vector<2x128xf32>
    tpu.vector_store %arg9[%c0_19, %c0_20], %18 {strides = array<i32>} : memref<2x128xf32, #tpu.memory_space<vmem>>, vector<2x128xf32>,
    return
  }
  func.func @transform_0(%arg0: i32) -> (i32, i32) {
    %c0_i32 = arith.constant 0 : i32
    %c0_i32_0 = arith.constant 0 : i32
    %c0_i32_1 = arith.constant 0 : i32
    return %c0_i32, %c0_i32_0 : i32, i32
  }
  func.func @transform_1(%arg0: i32) -> (i32, i32) {
    %c0_i32 = arith.constant 0 : i32
    %c0_i32_0 = arith.constant 0 : i32
    %c0_i32_1 = arith.constant 0 : i32
    return %c0_i32, %c0_i32_0 : i32, i32
  }
  func.func @transform_2(%arg0: i32) -> (i32, i32) {
    %c0_i32 = arith.constant 0 : i32
    %c0_i32_0 = arith.constant 0 : i32
    %c0_i32_1 = arith.constant 0 : i32
    return %c0_i32, %c0_i32_0 : i32, i32
  }
  func.func @transform_3(%arg0: i32) -> (i32, i32) {
    %c0_i32 = arith.constant 0 : i32
    %c0_i32_0 = arith.constant 0 : i32
    %c0_i32_1 = arith.constant 0 : i32
    return %c0_i32, %c0_i32_0 : i32, i32
  }
  func.func @transform_4(%arg0: i32) -> (i32, i32) {
    %c0_i32 = arith.constant 0 : i32
    %c0_i32_0 = arith.constant 0 : i32
    %c0_i32_1 = arith.constant 0 : i32
    return %c0_i32, %c0_i32_0 : i32, i32
  }
  func.func @transform_5(%arg0: i32) -> (i32, i32) {
    %c0_i32 = arith.constant 0 : i32
    %c0_i32_0 = arith.constant 0 : i32
    %c0_i32_1 = arith.constant 0 : i32
    return %c0_i32, %c0_i32_0 : i32, i32
  }
  func.func @transform_6(%arg0: i32) -> (i32, i32) {
    %c0_i32 = arith.constant 0 : i32
    %c0_i32_0 = arith.constant 0 : i32
    %c0_i32_1 = arith.constant 0 : i32
    return %c0_i32, %c0_i32_0 : i32, i32
  }
  func.func @transform_7(%arg0: i32) -> (i32, i32) {
    %c0_i32 = arith.constant 0 : i32
    %c0_i32_0 = arith.constant 0 : i32
    %c0_i32_1 = arith.constant 0 : i32
    return %c0_i32, %c0_i32_0 : i32, i32
  }
  func.func @transform_8(%arg0: i32) -> (i32, i32) {
    %c0_i32 = arith.constant 0 : i32
    %c0_i32_0 = arith.constant 0 : i32
    %c0_i32_1 = arith.constant 0 : i32
    return %c0_i32, %c0_i32_0 : i32, i32
  }
}

</mosaic_0001>

<bundles_post_ra>
// kernel: pose_classifier_forward.1
= control target key start
LH: loop header
LB: loop body
LE: loop exit
PB: predicated region body
PF: predicated region fallthrough
CT: control target
= control target key end

     0   :  { %s2032_s0 = inlined_call_operand.vmem [shape: f32[512,128], index: 0, kind: input, shape index: {}]   ;;  %s2033_s1 = inlined_call_operand.vmem [shape: f32[128,128], index: 1, kind: input, shape index: {}]   ;;  %s2034_s2 = inlined_call_operand.vmem [shape: f32[1,128], index: 2, kind: input, shape index: {}]   ;;  %s2035_s3 = inlined_call_operand.vmem [shape: f32[2,512], index: 3, kind: input, shape index: {}]   ;;  %s2036_s4 = inlined_call_operand.vmem [shape: f32[2,128], index: 4, kind: input, shape index: {}]   ;;  %s2037_s5 = inlined_call_operand.vmem [shape: f32[128,128], index: 5, kind: input, shape index: {}]   ;;  %s2038_s6 = inlined_call_operand.vmem [shape: f32[128,128], index: 6, kind: input, shape index: {}]   ;;  %s2039_s7 = inlined_call_operand.vmem [shape: f32[1,128], index: 7, kind: input, shape index: {}]   ;;  %s2040_s8 = inlined_call_operand.hbm [shape: f32[2,128], index: 8, kind: output, shape index: {}]  }
   0x1   :  { %v94_v0 = vld [vmem:[%s2033_s1] sm:$0xff]  ;;  %v95_v1 = vld [vmem:[%s2033_s1 + $0x8] sm:$0xff]  ;;  %v96_v2 = vld [vmem:[%s2033_s1 + $0x10] sm:$0xff] }
   0x2   :  { %v1309_v3 = vpack.c.bf16 %v95_v1, %v94_v0  ;;  %v97_v4 = vld [vmem:[%s2033_s1 + $0x18] sm:$0xff]  ;;  %v98_v6 = vld [vmem:[%s2033_s1 + $0x20] sm:$0xff]  ;;  %v99_v7 = vld [vmem:[%s2033_s1 + $0x28] sm:$0xff] }
   0x3   :  { %v1313_v5 = vpack.c.bf16 %v97_v4, %v96_v2  ;;  %v1317_v8 = vpack.c.bf16 %v99_v7, %v98_v6  ;;  %v30_v9 = vld [vmem:[%s2032_s0] sm:$0xff]  ;;  %v100_v10 = vld [vmem:[%s2033_s1 + $0x30] sm:$0xff]  ;;  %v101_v11 = vld [vmem:[%s2033_s1 + $0x38] sm:$0xff] }
   0x4   :  { %1310 = vmatprep.subr.bf16.mxu0 %v1309_v3  ;;  %1143 = vmatprep.mubr.f32.mxu0 %v30_v9  ;;  %v1321_v12 = vpack.c.bf16 %v101_v11, %v100_v10  ;;  %v102_v13 = vld [vmem:[%s2033_s1 + $0x40] sm:$0xff]  ;;  %v103_v14 = vld [vmem:[%s2033_s1 + $0x48] sm:$0xff]  ;;  %v104_v16 = vld [vmem:[%s2033_s1 + $0x50] sm:$0xff] }
   0x5   :  { %1312 = vmatpush3.bf16.msra.mxu0 %v1309_v3  ;;  %v1325_v15 = vpack.c.bf16 %v103_v14, %v102_v13  ;;  %v105_v17 = vld [vmem:[%s2033_s1 + $0x58] sm:$0xff]  ;;  %v106_v19 = vld [vmem:[%s2033_s1 + $0x60] sm:$0xff]  ;;  %v107_v20 = vld [vmem:[%s2033_s1 + $0x68] sm:$0xff] }
   0x6   :  { %1314 = vmatprep.subr.bf16.mxu0 %v1313_v5  ;;  %v1329_v18 = vpack.c.bf16 %v105_v17, %v104_v16  ;;  %v1333_v21 = vpack.c.bf16 %v107_v20, %v106_v19  ;;  %v108_v22 = vld [vmem:[%s2033_s1 + $0x70] sm:$0xff]  ;;  %v109_v23 = vld [vmem:[%s2033_s1 + $0x78] sm:$0xff] }
   0x7   :  { %v1337_v24 = vpack.c.bf16 %v109_v23, %v108_v22 }
   0x9   :  { %1316 = vmatpush3.bf16.msra.mxu0 %v1313_v5 }
   0xa   :  { %1318 = vmatprep.subr.bf16.mxu0 %v1317_v8 }
   0xd   :  { %1320 = vmatpush3.bf16.msra.mxu0 %v1317_v8 }
   0xe   :  { %1322 = vmatprep.subr.bf16.mxu0 %v1321_v12 }
  0x11   :  { %1324 = vmatpush3.bf16.msra.mxu0 %v1321_v12 }
  0x12   :  { %1326 = vmatprep.subr.bf16.mxu0 %v1325_v15 }
  0x15   :  { %1328 = vmatpush3.bf16.msra.mxu0 %v1325_v15 }
  0x16   :  { %1330 = vmatprep.subr.bf16.mxu0 %v1329_v18 }
  0x19   :  { %1332 = vmatpush3.bf16.msra.mxu0 %v1329_v18 }
  0x1a   :  { %1334 = vmatprep.subr.bf16.mxu0 %v1333_v21 }
  0x1b   :  { %13 = vsyncpa [#allocation3], 0  ;;  %v31_v25 = vld [vmem:[%s2032_s0 + $0x8] sm:$0xff]  ;;  %v32_v26 = vld [vmem:[%s2032_s0 + $0x10] sm:$0xff]  ;;  %vm1485_vm0 = vmmov 0   ;;  %s1487_s19 = smov [#allocation2]  }
  0x1c   :  { %v33_v27 = vld [vmem:[%s2032_s0 + $0x18] sm:$0xff]  ;;  %v34_v28 = vld [vmem:[%s2032_s0 + $0x20] sm:$0xff]  ;;  %v35_v29 = vld [vmem:[%s2032_s0 + $0x28] sm:$0xff]  ;;  %s917_s20 = sshll.u32 %s1487_s19, 4  ;;  %s918_s20 = int_to_ptr.vmem [resolvable:$true] %s917_s20 }
  0x1d   :  { %1336 = vmatpush3.bf16.msra.mxu0 %v1333_v21  ;;  %v36_v30 = vld [vmem:[%s2032_s0 + $0x30] sm:$0xff]  ;;  %v37_v31 = vld [vmem:[%s2032_s0 + $0x38] sm:$0xff]  ;;  %v38_v32 = vld [vmem:[%s2032_s0 + $0x40] sm:$0xff]  ;;  %p1464_p1 = scmp.lt.s32.totalorder %s918_s20, %s918_s20 }
  0x1e   :  { %1338 = vmatprep.subr.bf16.mxu0 %v1337_v24  ;;  %v39_v33 = vld [vmem:[%s2032_s0 + $0x48] sm:$0xff]  ;;  %v40_v34 = vld [vmem:[%s2032_s0 + $0x50] sm:$0xff]  ;;  %v41_v35 = vld [vmem:[%s2032_s0 + $0x58] sm:$0xff] }
  0x1f   :  { %v42_v36 = vld [vmem:[%s2032_s0 + $0x60] sm:$0xff]  ;;  %v43_v37 = vld [vmem:[%s2032_s0 + $0x68] sm:$0xff]  ;;  %v44_v38 = vld [vmem:[%s2032_s0 + $0x70] sm:$0xff] }
  0x20   :  { %v45_v39 = vld [vmem:[%s2032_s0 + $0x78] sm:$0xff]  ;;  %v46_v40 = vld [vmem:[%s2032_s0 + $0x80] sm:$0xff]  ;;  %v47_v41 = vld [vmem:[%s2032_s0 + $0x88] sm:$0xff] }
  0x21   :  { %1340 = vmatpush3.bf16.msra.mxu0 %v1337_v24  ;;  %v48_v42 = vld [vmem:[%s2032_s0 + $0x90] sm:$0xff]  ;;  %v49_v43 = vld [vmem:[%s2032_s0 + $0x98] sm:$0xff]  ;;  %v50_v44 = vld [vmem:[%s2032_s0 + $0xa0] sm:$0xff]  ;;  %v1483_v24 = vmov 1983009808  }
  0x22   :  { %v51_v45 = vld [vmem:[%s2032_s0 + $0xa8] sm:$0xff]  ;;  %v52_v46 = vld [vmem:[%s2032_s0 + $0xb0] sm:$0xff]  ;;  %v53_v47 = vld [vmem:[%s2032_s0 + $0xb8] sm:$0xff] }
  0x23   :  { %v54_v48 = vld [vmem:[%s2032_s0 + $0xc0] sm:$0xff]  ;;  %v55_v49 = vld [vmem:[%s2032_s0 + $0xc8] sm:$0xff]  ;;  %v56_v50 = vld [vmem:[%s2032_s0 + $0xd0] sm:$0xff] }
  0x24   :  { %1144 = vmatmul.mubr.f32.vlgmr.msra.gmra.mrb[0].mxu0 %v31_v25  ;;  %v57_v51 = vld [vmem:[%s2032_s0 + $0xd8] sm:$0xff]  ;;  %v58_v52 = vld [vmem:[%s2032_s0 + $0xe0] sm:$0xff]  ;;  %v59_v53 = vld [vmem:[%s2032_s0 + $0xe8] sm:$0xff]  ;;  %v570_v25 = vunpack.c.l.s4 %v1483_v24 }
  0x25   :  { %1146 = vmatprep.mubr.f32.mxu0 %v32_v26  ;;  %v60_v54 = vld [vmem:[%s2032_s0 + $0xf0] sm:$0xff]  ;;  %v61_v55 = vld [vmem:[%s2032_s0 + $0xf8] sm:$0xff]  ;;  %v62_v56 = vld [vmem:[%s2032_s0 + $0x100] sm:$0xff]  ;;  %v572_v26 = vlaneseq }
  0x26   :  { %v63_v57 = vld [vmem:[%s2032_s0 + $0x108] sm:$0xff]  ;;  %v64_v58 = vld [vmem:[%s2032_s0 + $0x110] sm:$0xff]  ;;  %v65_v59 = vld [vmem:[%s2032_s0 + $0x118] sm:$0xff] }
  0x27   :  { %v66_v60 = vld [vmem:[%s2032_s0 + $0x120] sm:$0xff]  ;;  %v67_v61 = vld [vmem:[%s2032_s0 + $0x128] sm:$0xff]  ;;  %v68_v62 = vld [vmem:[%s2032_s0 + $0x130] sm:$0xff] }
  0x28   :  { %1147 = vmatmul.mubr.f32.gmra.mrb[2].mxu0 %v33_v27  ;;  %v69_v63 = vld [vmem:[%s2032_s0 + $0x138] sm:$0xff]  ;;  %v70_v0 = vld [vmem:[%s2032_s0 + $0x140] sm:$0xff]  ;;  %v71_v1 = vld [vmem:[%s2032_s0 + $0x148] sm:$0xff]  ;;  %v571_v27 = vunpack.c.0.s8 %v570_v25 }
  0x29   :  { %1149 = vmatprep.mubr.f32.mxu0 %v34_v28  ;;  %v72_v2 = vld [vmem:[%s2032_s0 + $0x150] sm:$0xff]  ;;  %v73_v3 = vld [vmem:[%s2032_s0 + $0x158] sm:$0xff]  ;;  %v74_v4 = vld [vmem:[%s2032_s0 + $0x160] sm:$0xff]  ;;  %v573_v28 = vshrl.u32 %v572_v26, 7 }
  0x2a   :  { %v75_v5 = vld [vmem:[%s2032_s0 + $0x168] sm:$0xff]  ;;  %v76_v6 = vld [vmem:[%s2032_s0 + $0x170] sm:$0xff]  ;;  %v77_v7 = vld [vmem:[%s2032_s0 + $0x178] sm:$0xff] }
  0x2b   :  { %v78_v8 = vld [vmem:[%s2032_s0 + $0x180] sm:$0xff]  ;;  %v79_v9 = vld [vmem:[%s2032_s0 + $0x188] sm:$0xff]  ;;  %v80_v10 = vld [vmem:[%s2032_s0 + $0x190] sm:$0xff] }
  0x2c   :  { %1150 = vmatmul.mubr.f32.gmra.mrb[4].mxu0 %v35_v29  ;;  %v81_v11 = vld [vmem:[%s2032_s0 + $0x198] sm:$0xff]  ;;  %v82_v12 = vld [vmem:[%s2032_s0 + $0x1a0] sm:$0xff]  ;;  %v83_v13 = vld [vmem:[%s2032_s0 + $0x1a8] sm:$0xff]  ;;  %v574_v29 = vsub.s32 %v571_v27, %v573_v28 }
  0x2d   :  { %1152 = vmatprep.mubr.f32.mxu0 %v36_v30  ;;  %v84_v14 = vld [vmem:[%s2032_s0 + $0x1b0] sm:$0xff]  ;;  %v85_v15 = vld [vmem:[%s2032_s0 + $0x1b8] sm:$0xff]  ;;  %v86_v16 = vld [vmem:[%s2032_s0 + $0x1c0] sm:$0xff] }
  0x2e   :  { %v87_v17 = vld [vmem:[%s2032_s0 + $0x1c8] sm:$0xff]  ;;  %v88_v18 = vld [vmem:[%s2032_s0 + $0x1d0] sm:$0xff]  ;;  %v89_v19 = vld [vmem:[%s2032_s0 + $0x1d8] sm:$0xff] }
  0x2f   :  { %v90_v20 = vld [vmem:[%s2032_s0 + $0x1e0] sm:$0xff]  ;;  %v91_v21 = vld [vmem:[%s2032_s0 + $0x1e8] sm:$0xff]  ;;  %v92_v22 = vld [vmem:[%s2032_s0 + $0x1f0] sm:$0xff] }
  0x30   :  { %1153 = vmatmul.mubr.f32.gmra.mrb[6].mxu0 %v37_v31  ;;  %v93_v23 = vld [vmem:[%s2032_s0 + $0x1f8] sm:$0xff]  ;;  %v566_v30 = vld [vmem:[%s2035_s3] sm:$0xff] }
  0x31   :  { %1155 = vmatprep.mubr.f32.mxu0 %v38_v32  ;;  %v1776_v31 = vrot.slane %v566_v30, %v574_v29 }
  0x33   :  { %v583_v32 = vcombine.high %v1776_v31, %v1776_v31 }
  0x34   :  { %1156 = vmatmul.mubr.f32.gmra.mrb[8].mxu0 %v39_v33  ;;  %v1783_v33 = vld [vmem:[%s2034_s2] ss:$0 sm:$0xff] }
  0x35   :  { %1158 = vmatprep.mubr.f32.mxu0 %v40_v34  ;;  %653 = vmatprep.mubr.f32.mxu1 %v583_v32  ;;  %v568_v34 = vcombine.high %v566_v30, %v566_v30 }
  0x38   :  { %1159 = vmatmul.mubr.f32.gmra.mrb[10].mxu0 %v41_v35 }
  0x39   :  { %1161 = vmatprep.mubr.f32.mxu0 %v42_v36 }
  0x3c   :  { %1162 = vmatmul.mubr.f32.gmra.mrb[12].mxu0 %v43_v37 }
  0x3d   :  { %1164 = vmatprep.mubr.f32.mxu0 %v44_v38 }
  0x40   :  { %1165 = vmatmul.mubr.f32.gmra.mrb[14].mxu0 %v45_v39 }
  0x41   :  { %1167 = vmatprep.mubr.f32.mxu0 %v46_v40  ;;  %v1787_v40 = vrot.slane %v568_v34, %v574_v29 }
  0x44   :  { %1168 = vmatmul.mubr.f32.gmra.mrb[16].mxu0 %v47_v41 }
  0x45   :  { %1170 = vmatprep.mubr.f32.mxu0 %v48_v42 }
  0x48   :  { %1171 = vmatmul.mubr.f32.gmra.mrb[18].mxu0 %v49_v43 }
  0x49   :  { %1173 = vmatprep.mubr.f32.mxu0 %v50_v44 }
  0x4c   :  { %1174 = vmatmul.mubr.f32.gmra.mrb[20].mxu0 %v51_v45 }
  0x4d   :  { %1176 = vmatprep.mubr.f32.mxu0 %v52_v46 }
  0x50   :  { %1177 = vmatmul.mubr.f32.gmra.mrb[22].mxu0 %v53_v47 }
  0x51   :  { %1179 = vmatprep.mubr.f32.mxu0 %v54_v48 }
  0x54   :  { %1180 = vmatmul.mubr.f32.gmra.mrb[24].mxu0 %v55_v49 }
  0x55   :  { %1182 = vmatprep.mubr.f32.mxu0 %v56_v50 }
  0x58   :  { %1183 = vmatmul.mubr.f32.gmra.mrb[26].mxu0 %v57_v51 }
  0x59   :  { %1185 = vmatprep.mubr.f32.mxu0 %v58_v52 }
  0x5c   :  { %1186 = vmatmul.mubr.f32.gmra.mrb[28].mxu0 %v59_v53 }
  0x5d   :  { %1188 = vmatprep.mubr.f32.mxu0 %v60_v54 }
  0x60   :  { %1189 = vmatmul.mubr.f32.gmra.mrb[30].mxu0 %v61_v55 }
  0x61   :  { %1191 = vmatprep.mubr.f32.mxu0 %v62_v56 }
  0x64   :  { %1192 = vmatmul.mubr.f32.gmra.mrb[32].mxu0 %v63_v57 }
  0x65   :  { %1194 = vmatprep.mubr.f32.mxu0 %v64_v58 }
  0x68   :  { %1195 = vmatmul.mubr.f32.gmra.mrb[34].mxu0 %v65_v59 }
  0x69   :  { %1197 = vmatprep.mubr.f32.mxu0 %v66_v60 }
  0x6c   :  { %1198 = vmatmul.mubr.f32.gmra.mrb[36].mxu0 %v67_v61 }
  0x6d   :  { %1200 = vmatprep.mubr.f32.mxu0 %v68_v62 }
  0x70   :  { %1201 = vmatmul.mubr.f32.gmra.mrb[38].mxu0 %v69_v63 }
  0x71   :  { %1203 = vmatprep.mubr.f32.mxu0 %v70_v0 }
  0x74   :  { %1204 = vmatmul.mubr.f32.gmra.mrb[40].mxu0 %v71_v1 }
  0x75   :  { %1206 = vmatprep.mubr.f32.mxu0 %v72_v2 }
  0x78   :  { %1207 = vmatmul.mubr.f32.gmra.mrb[42].mxu0 %v73_v3 }
  0x79   :  { %1209 = vmatprep.mubr.f32.mxu0 %v74_v4 }
  0x7c   :  { %1210 = vmatmul.mubr.f32.gmra.mrb[44].mxu0 %v75_v5 }
  0x7d   :  { %1212 = vmatprep.mubr.f32.mxu0 %v76_v6 }
  0x80   :  { %1213 = vmatmul.mubr.f32.gmra.mrb[46].mxu0 %v77_v7 }
  0x81   :  { %1215 = vmatprep.mubr.f32.mxu0 %v78_v8 }
  0x84   :  { %1216 = vmatmul.mubr.f32.gmra.mrb[48].mxu0 %v79_v9 }
  0x85   :  { %1218 = vmatprep.mubr.f32.mxu0 %v80_v10 }
  0x88   :  { %1219 = vmatmul.mubr.f32.gmra.mrb[50].mxu0 %v81_v11 }
  0x89   :  { %1221 = vmatprep.mubr.f32.mxu0 %v82_v12 }
  0x8c   :  { %1222 = vmatmul.mubr.f32.gmra.mrb[52].mxu0 %v83_v13 }
  0x8d   :  { %1224 = vmatprep.mubr.f32.mxu0 %v84_v14 }
  0x90   :  { %1225 = vmatmul.mubr.f32.gmra.mrb[54].mxu0 %v85_v15 }
  0x91   :  { %1227 = vmatprep.mubr.f32.mxu0 %v86_v16 }
  0x94   :  { %1228 = vmatmul.mubr.f32.gmra.mrb[56].mxu0 %v87_v17 }
  0x95   :  { %1230 = vmatprep.mubr.f32.mxu0 %v88_v18 }
  0x98   :  { %1231 = vmatmul.mubr.f32.gmra.mrb[58].mxu0 %v89_v19 }
  0x99   :  { %1233 = vmatprep.mubr.f32.mxu0 %v90_v20 }
  0x9c   :  { %1234 = vmatmul.mubr.f32.gmra.mrb[60].mxu0 %v91_v21 }
  0x9d   :  { %1236 = vmatprep.mubr.f32.mxu0 %v92_v22 }
  0xa0   :  { %1237 = vmatmul.mubr.f32.gmra.mrb[62].mxu0 %v93_v23 }
  0xf7   :  { %v1145_v35 = vpop.f32.mrb[0].mxu0 }
  0xf8   :  { %v189_v36 = vadd.f32 %v1145_v35, %v1783_v33  ;;  %v183_v37 = vpop.f32.mrb[1].mxu0 }
  0xf9   :  { %v184_v38 = vadd.f32 %v1783_v33, %v183_v37 }
  0xfa   :  { %v503_v39 = vmax.f32 %v189_v36, 0.0 }
  0xfb   :  { %v502_v41 = vmax.f32 %v184_v38, 0.0  ;;  %v1148_v42 = vpop.f32.mrb[2].mxu0 }
  0xfc   :  { %v199_v43 = vadd.f32 %v1148_v42, %v1783_v33  ;;  %v193_v44 = vpop.f32.mrb[3].mxu0 }
  0xfd   :  { %v194_v45 = vadd.f32 %v1783_v33, %v193_v44  ;;  %v1343_v46 = vpack.c.bf16 %v503_v39, %v502_v41 }
  0xfe   :  { %v505_v47 = vmax.f32 %v199_v43, 0.0 }
  0xff   :  { %v504_v48 = vmax.f32 %v194_v45, 0.0  ;;  %v1151_v49 = vpop.f32.mrb[4].mxu0 }
 0x100   :  { %v209_v50 = vadd.f32 %v1151_v49, %v1783_v33  ;;  %v203_v51 = vpop.f32.mrb[5].mxu0 }
 0x101   :  { %v1792_v52 = vpack.c.bf16 %v505_v47, %v504_v48  ;;  %v204_v53 = vadd.f32 %v1783_v33, %v203_v51 }
 0x102   :  { %v507_v54 = vmax.f32 %v209_v50, 0.0 }
 0x103   :  { %v506_v55 = vmax.f32 %v204_v53, 0.0  ;;  %v1154_v56 = vpop.f32.mrb[6].mxu0 }
 0x104   :  { %v219_v57 = vadd.f32 %v1154_v56, %v1783_v33  ;;  %v213_v58 = vpop.f32.mrb[7].mxu0 }
 0x105   :  { %v1796_v59 = vpack.c.bf16 %v507_v54, %v506_v55  ;;  %v214_v60 = vadd.f32 %v1783_v33, %v213_v58 }
 0x106   :  { %v509_v61 = vmax.f32 %v219_v57, 0.0 }
 0x107   :  { %v508_v62 = vmax.f32 %v214_v60, 0.0  ;;  %v1157_v63 = vpop.f32.mrb[8].mxu0 }
 0x108   :  { %v229_v0 = vadd.f32 %v1157_v63, %v1783_v33  ;;  %v223_v1 = vpop.f32.mrb[9].mxu0 }
 0x109   :  { %v1800_v2 = vpack.c.bf16 %v509_v61, %v508_v62  ;;  %v224_v3 = vadd.f32 %v1783_v33, %v223_v1 }
 0x10a   :  { %v511_v4 = vmax.f32 %v229_v0, 0.0 }
 0x10b   :  { %v510_v5 = vmax.f32 %v224_v3, 0.0  ;;  %v1160_v6 = vpop.f32.mrb[10].mxu0 }
 0x10c   :  { %v239_v7 = vadd.f32 %v1160_v6, %v1783_v33  ;;  %v233_v8 = vpop.f32.mrb[11].mxu0 }
 0x10d   :  { %v1804_v9 = vpack.c.bf16 %v511_v4, %v510_v5  ;;  %v234_v10 = vadd.f32 %v1783_v33, %v233_v8 }
 0x10e   :  { %v513_v11 = vmax.f32 %v239_v7, 0.0 }
 0x10f   :  { %v512_v12 = vmax.f32 %v234_v10, 0.0  ;;  %v1163_v13 = vpop.f32.mrb[12].mxu0 }
 0x110   :  { %v249_v14 = vadd.f32 %v1163_v13, %v1783_v33  ;;  %v243_v15 = vpop.f32.mrb[13].mxu0 }
 0x111   :  { %v1808_v16 = vpack.c.bf16 %v513_v11, %v512_v12  ;;  %v244_v17 = vadd.f32 %v1783_v33, %v243_v15 }
 0x112   :  { %v515_v18 = vmax.f32 %v249_v14, 0.0 }
 0x113   :  { %v514_v19 = vmax.f32 %v244_v17, 0.0  ;;  %v1166_v20 = vpop.f32.mrb[14].mxu0 }
 0x114   :  { %v259_v21 = vadd.f32 %v1166_v20, %v1783_v33  ;;  %v253_v22 = vpop.f32.mrb[15].mxu0 }
 0x115   :  { %v1812_v23 = vpack.c.bf16 %v515_v18, %v514_v19  ;;  %v254_v24 = vadd.f32 %v1783_v33, %v253_v22 }
 0x116   :  { %v517_v25 = vmax.f32 %v259_v21, 0.0 }
 0x117   :  { %v516_v26 = vmax.f32 %v254_v24, 0.0  ;;  %v1169_v27 = vpop.f32.mrb[16].mxu0 }
 0x118   :  { %v269_v28 = vadd.f32 %v1169_v27, %v1783_v33  ;;  %v263_v29 = vpop.f32.mrb[17].mxu0 }
 0x119   :  { %v1816_v30 = vpack.c.bf16 %v517_v25, %v516_v26  ;;  %v264_v32 = vadd.f32 %v1783_v33, %v263_v29 }
 0x11a   :  { %v519_v34 = vmax.f32 %v269_v28, 0.0 }
 0x11b   :  { %v518_v35 = vmax.f32 %v264_v32, 0.0  ;;  %v1172_v36 = vpop.f32.mrb[18].mxu0 }
 0x11c   :  { %v279_v37 = vadd.f32 %v1172_v36, %v1783_v33  ;;  %v273_v38 = vpop.f32.mrb[19].mxu0  ;;  %v584_v36 = vcombine.high %v1787_v40, %v1787_v40 }
 0x11d   :  { %v274_v39 = vadd.f32 %v1783_v33, %v273_v38  ;;  %v1341_v41 = vpack.c.bf16 %v519_v34, %v518_v35 }
 0x11e   :  { %v521_v42 = vmax.f32 %v279_v37, 0.0 }
 0x11f   :  { %v520_v43 = vmax.f32 %v274_v39, 0.0  ;;  %v1175_v44 = vpop.f32.mrb[20].mxu0  ;;  %1342 = vmatprep.subr.bf16.mxu1 %v1341_v41 }
 0x120   :  { %v289_v45 = vadd.f32 %v1175_v44, %v1783_v33  ;;  %v283_v47 = vpop.f32.mrb[21].mxu0  ;;  %1344 = vmatpush3.bf16.msra.mxu1 %v1343_v46 }
 0x121   :  { %v1345_v48 = vpack.c.bf16 %v521_v42, %v520_v43  ;;  %v284_v49 = vadd.f32 %v1783_v33, %v283_v47 }
 0x122   :  { %v523_v50 = vmax.f32 %v289_v45, 0.0 }
 0x123   :  { %v522_v51 = vmax.f32 %v284_v49, 0.0  ;;  %v1178_v53 = vpop.f32.mrb[22].mxu0  ;;  %1346 = vmatprep.subr.bf16.mxu1 %v1345_v48 }
 0x124   :  { %v299_v54 = vadd.f32 %v1178_v53, %v1783_v33  ;;  %v293_v55 = vpop.f32.mrb[23].mxu0  ;;  %1348 = vmatpush3.bf16.msra.mxu1 %v1792_v52 }
 0x125   :  { %v1349_v56 = vpack.c.bf16 %v523_v50, %v522_v51  ;;  %v294_v57 = vadd.f32 %v1783_v33, %v293_v55 }
 0x126   :  { %v525_v58 = vmax.f32 %v299_v54, 0.0 }
 0x127   :  { %v524_v60 = vmax.f32 %v294_v57, 0.0  ;;  %v1181_v61 = vpop.f32.mrb[24].mxu0  ;;  %1350 = vmatprep.subr.bf16.mxu1 %v1349_v56 }
 0x128   :  { %v309_v46 = vadd.f32 %v1181_v61, %v1783_v33  ;;  %v303_v62 = vpop.f32.mrb[25].mxu0  ;;  %1352 = vmatpush3.bf16.msra.mxu1 %v1796_v59 }
 0x129   :  { %v1353_v63 = vpack.c.bf16 %v525_v58, %v524_v60  ;;  %v304_v0 = vadd.f32 %v1783_v33, %v303_v62 }
 0x12a   :  { %v527_v1 = vmax.f32 %v309_v46, 0.0 }
 0x12b   :  { %v526_v3 = vmax.f32 %v304_v0, 0.0  ;;  %v1184_v4 = vpop.f32.mrb[26].mxu0  ;;  %1354 = vmatprep.subr.bf16.mxu1 %v1353_v63 }
 0x12c   :  { %v319_v52 = vadd.f32 %v1184_v4, %v1783_v33  ;;  %v313_v5 = vpop.f32.mrb[27].mxu0  ;;  %1356 = vmatpush3.bf16.msra.mxu1 %v1800_v2 }
 0x12d   :  { %v1357_v6 = vpack.c.bf16 %v527_v1, %v526_v3  ;;  %v314_v7 = vadd.f32 %v1783_v33, %v313_v5 }
 0x12e   :  { %v529_v8 = vmax.f32 %v319_v52, 0.0 }
 0x12f   :  { %v528_v10 = vmax.f32 %v314_v7, 0.0  ;;  %v1187_v11 = vpop.f32.mrb[28].mxu0  ;;  %1358 = vmatprep.subr.bf16.mxu1 %v1357_v6 }
 0x130   :  { %v329_v59 = vadd.f32 %v1187_v11, %v1783_v33  ;;  %v323_v12 = vpop.f32.mrb[29].mxu0  ;;  %1360 = vmatpush3.bf16.msra.mxu1 %v1804_v9 }
 0x131   :  { %v1361_v13 = vpack.c.bf16 %v529_v8, %v528_v10  ;;  %v324_v14 = vadd.f32 %v1783_v33, %v323_v12 }
 0x132   :  { %v531_v15 = vmax.f32 %v329_v59, 0.0 }
 0x133   :  { %v530_v17 = vmax.f32 %v324_v14, 0.0  ;;  %v1190_v18 = vpop.f32.mrb[30].mxu0  ;;  %1362 = vmatprep.subr.bf16.mxu1 %v1361_v13 }
 0x134   :  { %v339_v2 = vadd.f32 %v1190_v18, %v1783_v33  ;;  %v333_v19 = vpop.f32.mrb[31].mxu0  ;;  %1364 = vmatpush3.bf16.msra.mxu1 %v1808_v16 }
 0x135   :  { %v1365_v20 = vpack.c.bf16 %v531_v15, %v530_v17  ;;  %v334_v21 = vadd.f32 %v1783_v33, %v333_v19 }
 0x136   :  { %v533_v22 = vmax.f32 %v339_v2, 0.0 }
 0x137   :  { %v532_v24 = vmax.f32 %v334_v21, 0.0  ;;  %v1193_v25 = vpop.f32.mrb[32].mxu0  ;;  %1366 = vmatprep.subr.bf16.mxu1 %v1365_v20 }
 0x138   :  { %v349_v9 = vadd.f32 %v1193_v25, %v1783_v33  ;;  %v343_v26 = vpop.f32.mrb[33].mxu0  ;;  %1368 = vmatpush3.bf16.msra.mxu1 %v1812_v23 }
 0x139   :  { %v1369_v27 = vpack.c.bf16 %v533_v22, %v532_v24  ;;  %v344_v28 = vadd.f32 %v1783_v33, %v343_v26 }
 0x13a   :  { %v535_v29 = vmax.f32 %v349_v9, 0.0 }
 0x13b   :  { %v534_v32 = vmax.f32 %v344_v28, 0.0  ;;  %v1196_v34 = vpop.f32.mrb[34].mxu0  ;;  %1370 = vmatprep.subr.bf16.mxu1 %v1369_v27 }
 0x13c   :  { %v359_v16 = vadd.f32 %v1196_v34, %v1783_v33  ;;  %v353_v35 = vpop.f32.mrb[35].mxu0  ;;  %1372 = vmatpush3.bf16.msra.mxu1 %v1816_v30 }
 0x13d   :  { %v1845_v37 = vpack.c.bf16 %v535_v29, %v534_v32  ;;  %v354_v38 = vadd.f32 %v1783_v33, %v353_v35 }
 0x13e   :  { %v537_v23 = vmax.f32 %v359_v16, 0.0 }
 0x13f   :  { %v536_v39 = vmax.f32 %v354_v38, 0.0  ;;  %v1199_v41 = vpop.f32.mrb[36].mxu0  ;;  %654 = vmatmul.mubr.f32.vlgmr.msra.gmra.mrb[0].mxu1 %v1776_v31 }
 0x140   :  { %v369_v42 = vadd.f32 %v1199_v41, %v1783_v33  ;;  %v363_v43 = vpop.f32.mrb[37].mxu0  ;;  %723 = vmatprep.mubr.f32.mxu1 %v584_v36 }
 0x141   :  { %v1850_v44 = vpack.c.bf16 %v537_v23, %v536_v39  ;;  %v364_v30 = vadd.f32 %v1783_v33, %v363_v43 }
 0x142   :  { %v539_v45 = vmax.f32 %v369_v42, 0.0 }
 0x143   :  { %v538_v47 = vmax.f32 %v364_v30, 0.0  ;;  %v1202_v48 = vpop.f32.mrb[38].mxu0 }
 0x144   :  { %v379_v49 = vadd.f32 %v1202_v48, %v1783_v33  ;;  %v373_v50 = vpop.f32.mrb[39].mxu0 }
 0x145   :  { %v1854_v51 = vpack.c.bf16 %v539_v45, %v538_v47  ;;  %v374_v53 = vadd.f32 %v1783_v33, %v373_v50 }
 0x146   :  { %v541_v54 = vmax.f32 %v379_v49, 0.0 }
 0x147   :  { %v540_v31 = vmax.f32 %v374_v53, 0.0  ;;  %v1205_v55 = vpop.f32.mrb[40].mxu0 }
 0x148   :  { %v389_v56 = vadd.f32 %v1205_v55, %v1783_v33  ;;  %v383_v57 = vpop.f32.mrb[41].mxu0 }
 0x149   :  { %v1858_v58 = vpack.c.bf16 %v541_v54, %v540_v31  ;;  %v384_v60 = vadd.f32 %v1783_v33, %v383_v57 }
 0x14a   :  { %v543_v61 = vmax.f32 %v389_v56, 0.0 }
 0x14b   :  { %v542_v46 = vmax.f32 %v384_v60, 0.0  ;;  %v1208_v62 = vpop.f32.mrb[42].mxu0 }
 0x14c   :  { %v399_v63 = vadd.f32 %v1208_v62, %v1783_v33  ;;  %v393_v0 = vpop.f32.mrb[43].mxu0 }
 0x14d   :  { %v1862_v1 = vpack.c.bf16 %v543_v61, %v542_v46  ;;  %v394_v3 = vadd.f32 %v1783_v33, %v393_v0 }
 0x14e   :  { %v545_v4 = vmax.f32 %v399_v63, 0.0 }
 0x14f   :  { %v544_v52 = vmax.f32 %v394_v3, 0.0  ;;  %v1211_v5 = vpop.f32.mrb[44].mxu0 }
 0x150   :  { %v409_v6 = vadd.f32 %v1211_v5, %v1783_v33  ;;  %v403_v7 = vpop.f32.mrb[45].mxu0 }
 0x151   :  { %v1866_v8 = vpack.c.bf16 %v545_v4, %v544_v52  ;;  %v404_v10 = vadd.f32 %v1783_v33, %v403_v7 }
 0x152   :  { %v547_v11 = vmax.f32 %v409_v6, 0.0 }
 0x153   :  { %v546_v59 = vmax.f32 %v404_v10, 0.0  ;;  %v1214_v12 = vpop.f32.mrb[46].mxu0 }
 0x154   :  { %v419_v13 = vadd.f32 %v1214_v12, %v1783_v33  ;;  %v413_v14 = vpop.f32.mrb[47].mxu0 }
 0x155   :  { %v1870_v15 = vpack.c.bf16 %v547_v11, %v546_v59  ;;  %v414_v17 = vadd.f32 %v1783_v33, %v413_v14 }
 0x156   :  { %v549_v18 = vmax.f32 %v419_v13, 0.0 }
 0x157   :  { %v548_v2 = vmax.f32 %v414_v17, 0.0  ;;  %v1217_v19 = vpop.f32.mrb[48].mxu0  ;;  %v746_v17 = vld [vmem:[%s2038_s6] sm:$0xff] }
 0x158   :  { %v429_v20 = vadd.f32 %v1217_v19, %v1783_v33  ;;  %v423_v21 = vpop.f32.mrb[49].mxu0 }
 0x159   :  { %v1874_v22 = vpack.c.bf16 %v549_v18, %v548_v2  ;;  %v424_v24 = vadd.f32 %v1783_v33, %v423_v21  ;;  %v747_v18 = vld [vmem:[%s2038_s6 + $0x8] sm:$0xff]  ;;  %v1484_v2 = vmov 0.0|0.0  }
 0x15a   :  { %v551_v25 = vmax.f32 %v429_v20, 0.0  ;;  %v750_v20 = vld [vmem:[%s2038_s6 + $0x20] sm:$0xff]  ;;  %v751_v21 = vld [vmem:[%s2038_s6 + $0x28] sm:$0xff] }
 0x15b   :  { %v550_v9 = vmax.f32 %v424_v24, 0.0  ;;  %v1220_v26 = vpop.f32.mrb[50].mxu0  ;;  %v753_v24 = vld [vmem:[%s2038_s6 + $0x38] sm:$0xff] }
 0x15c   :  { %v439_v27 = vadd.f32 %v1220_v26, %v1783_v33  ;;  %v433_v28 = vpop.f32.mrb[51].mxu0  ;;  %v755_v26 = vld [vmem:[%s2038_s6 + $0x48] sm:$0xff] }
 0x15d   :  { %v1373_v29 = vpack.c.bf16 %v551_v25, %v550_v9  ;;  %v434_v32 = vadd.f32 %v1783_v33, %v433_v28  ;;  %v754_v9 = vld [vmem:[%s2038_s6 + $0x40] sm:$0xff]  ;;  %v756_v28 = vld [vmem:[%s2038_s6 + $0x50] sm:$0xff] }
 0x15e   :  { %v553_v34 = vmax.f32 %v439_v27, 0.0  ;;  %v1418_v27 = vpack.c.bf16 %v755_v26, %v754_v9 }
 0x15f   :  { %v552_v16 = vmax.f32 %v434_v32, 0.0  ;;  %v1223_v35 = vpop.f32.mrb[52].mxu0  ;;  %1374 = vmatprep.subr.bf16.mxu1 %v1373_v29  ;;  %v757_v29 = vld [vmem:[%s2038_s6 + $0x58] sm:$0xff] }
 0x160   :  { %v449_v36 = vadd.f32 %v1223_v35, %v1783_v33  ;;  %v443_v38 = vpop.f32.mrb[53].mxu0  ;;  %1376 = vmatpush3.bf16.msra.mxu1 %v1845_v37  ;;  %v1421_v32 = vpack.c.bf16 %v757_v29, %v756_v28 }
 0x161   :  { %v1377_v23 = vpack.c.bf16 %v553_v34, %v552_v16  ;;  %v444_v39 = vadd.f32 %v1783_v33, %v443_v38  ;;  %v758_v34 = vld [vmem:[%s2038_s6 + $0x60] sm:$0xff]  ;;  %v759_v16 = vld [vmem:[%s2038_s6 + $0x68] sm:$0xff]  ;;  %v761_v38 = vld [vmem:[%s2038_s6 + $0x78] sm:$0xff] }
 0x162   :  { %v555_v41 = vmax.f32 %v449_v36, 0.0  ;;  %v1424_v35 = vpack.c.bf16 %v759_v16, %v758_v34  ;;  %v760_v36 = vld [vmem:[%s2038_s6 + $0x70] sm:$0xff] }
 0x163   :  { %v554_v42 = vmax.f32 %v444_v39, 0.0  ;;  %v1226_v43 = vpop.f32.mrb[54].mxu0  ;;  %1378 = vmatprep.subr.bf16.mxu1 %v1377_v23  ;;  %v1486_v23 = vmov 0.0   ;;  %v1427_v39 = vpack.c.bf16 %v761_v38, %v760_v36 }
 0x164   :  { %v459_v30 = vadd.f32 %v1226_v43, %v1783_v33  ;;  %v453_v45 = vpop.f32.mrb[55].mxu0  ;;  %1380 = vmatpush3.bf16.msra.mxu1 %v1850_v44  ;;  %v745_v43 = vld [vmem:[%s2036_s4] sm:$0x3] }
 0x165   :  { %v1381_v47 = vpack.c.bf16 %v555_v41, %v554_v42  ;;  %v454_v48 = vadd.f32 %v1783_v33, %v453_v45  ;;  %v729_v41 = vld [vmem:[%s2037_s5] sm:$0xff]  ;;  %v730_v42 = vld [vmem:[%s2037_s5 + $0x8] sm:$0xff]  ;;  %v731_v45 = vld [vmem:[%s2037_s5 + $0x10] sm:$0xff] }
 0x166   :  { %v557_v49 = vmax.f32 %v459_v30, 0.0  ;;  %v1430_v30 = vpack.c.bf16 %v730_v42, %v729_v41 }
 0x167   :  { %v556_v50 = vmax.f32 %v454_v48, 0.0  ;;  %v1229_v53 = vpop.f32.mrb[56].mxu0  ;;  %1382 = vmatprep.subr.bf16.mxu1 %v1381_v47  ;;  %v732_v47 = vld [vmem:[%s2037_s5 + $0x18] sm:$0xff] }
 0x168   :  { %v469_v37 = vadd.f32 %v1229_v53, %v1783_v33  ;;  %v463_v54 = vpop.f32.mrb[57].mxu0  ;;  %1384 = vmatpush3.bf16.msra.mxu1 %v1854_v51  ;;  %v1433_v48 = vpack.c.bf16 %v732_v47, %v731_v45 }
 0x169   :  { %v1385_v31 = vpack.c.bf16 %v557_v49, %v556_v50  ;;  %v464_v55 = vadd.f32 %v1783_v33, %v463_v54  ;;  %v733_v49 = vld [vmem:[%s2037_s5 + $0x20] sm:$0xff]  ;;  %v734_v50 = vld [vmem:[%s2037_s5 + $0x28] sm:$0xff]  ;;  %v736_v54 = vld [vmem:[%s2037_s5 + $0x38] sm:$0xff] }
 0x16a   :  { %v559_v56 = vmax.f32 %v469_v37, 0.0  ;;  %v1436_v53 = vpack.c.bf16 %v734_v50, %v733_v49  ;;  %v735_v37 = vld [vmem:[%s2037_s5 + $0x30] sm:$0xff] }
 0x16b   :  { %v558_v57 = vmax.f32 %v464_v55, 0.0  ;;  %v1232_v60 = vpop.f32.mrb[58].mxu0  ;;  %1386 = vmatprep.subr.bf16.mxu1 %v1385_v31  ;;  %v1439_v31 = vpack.c.bf16 %v736_v54, %v735_v37  ;;  %v737_v55 = vld [vmem:[%s2037_s5 + $0x40] sm:$0xff] }
 0x16c   :  { %v479_v44 = vadd.f32 %v1232_v60, %v1783_v33  ;;  %v473_v61 = vpop.f32.mrb[59].mxu0  ;;  %1388 = vmatpush3.bf16.msra.mxu1 %v1858_v58  ;;  %v739_v60 = vld [vmem:[%s2037_s5 + $0x50] sm:$0xff] }
 0x16d   :  { %v1389_v46 = vpack.c.bf16 %v559_v56, %v558_v57  ;;  %v474_v62 = vadd.f32 %v1783_v33, %v473_v61  ;;  %v738_v56 = vld [vmem:[%s2037_s5 + $0x48] sm:$0xff] }
 0x16e   :  { %v561_v63 = vmax.f32 %v479_v44, 0.0  ;;  %v1442_v57 = vpack.c.bf16 %v738_v56, %v737_v55  ;;  %v740_v44 = vld [vmem:[%s2037_s5 + $0x58] sm:$0xff] }
 0x16f   :  { %v560_v0 = vmax.f32 %v474_v62, 0.0  ;;  %v1235_v3 = vpop.f32.mrb[60].mxu0  ;;  %1390 = vmatprep.subr.bf16.mxu1 %v1389_v46  ;;  %v1445_v61 = vpack.c.bf16 %v740_v44, %v739_v60  ;;  %v741_v46 = vld [vmem:[%s2037_s5 + $0x60] sm:$0xff]  ;;  %v742_v62 = vld [vmem:[%s2037_s5 + $0x68] sm:$0xff] }
 0x170   :  { %v489_v51 = vadd.f32 %v1235_v3, %v1783_v33  ;;  %v483_v4 = vpop.f32.mrb[61].mxu0  ;;  %1392 = vmatpush3.bf16.msra.mxu1 %v1862_v1  ;;  %v744_v3 = vld [vmem:[%s2037_s5 + $0x78] sm:$0xff] }
 0x171   :  { %v1393_v52 = vpack.c.bf16 %v561_v63, %v560_v0  ;;  %v484_v5 = vadd.f32 %v1783_v33, %v483_v4  ;;  %v1448_v63 = vpack.c.bf16 %v742_v62, %v741_v46  ;;  %v743_v0 = vld [vmem:[%s2037_s5 + $0x70] sm:$0xff]  ;;  %s1459_s5 = scalar_lea.vmem %s918_s20, 32 }
 0x172   :  { %v563_v6 = vmax.f32 %v489_v51, 0.0  ;;  %v1451_v51 = vpack.c.bf16 %v744_v3, %v743_v0  ;;  %p1460_p0 = scmp.ne.s32.totalorder %s918_s20, %s1459_s5  ;;  %p1465_p2 = scmp.lt.s32.totalorder %s1459_s5, %s1459_s5 }
 0x173   :  { %v562_v7 = vmax.f32 %v484_v5, 0.0  ;;  %v1238_v10 = vpop.f32.mrb[62].mxu0  ;;  %1394 = vmatprep.subr.bf16.mxu1 %v1393_v52 }
 0x174   :  { %v499_v58 = vadd.f32 %v1238_v10, %v1783_v33  ;;  %v493_v11 = vpop.f32.mrb[63].mxu0  ;;  %1396 = vmatpush3.bf16.msra.mxu1 %v1866_v8  ;;  %v1406_v8 = vpack.c.bf16 %v747_v18, %v746_v17  ;;  %p1466_p3 = por %p1465_p2, %p1464_p1 }
 0x175   :  { %v1397_v59 = vpack.c.bf16 %v563_v6, %v562_v7  ;;  %v494_v12 = vadd.f32 %v1783_v33, %v493_v11  ;;  %v748_v33 = vld [vmem:[%s2038_s6 + $0x10] sm:$0xff] }
 0x176   :  { %v565_v13 = vmax.f32 %v499_v58, 0.0  ;;  %p1467_p4 = pnand %p1466_p3, %p1460_p0 }
 0x177   :  { %v564_v14 = vmax.f32 %v494_v12, 0.0  ;;  %1398 = vmatprep.subr.bf16.mxu1 %v1397_v59 }
 0x178   :  { %1400 = vmatpush3.bf16.msra.mxu1 %v1870_v15  ;;  %v749_v15 = vld [vmem:[%s2038_s6 + $0x18] sm:$0xff] }
 0x179   :  { %v1401_v1 = vpack.c.bf16 %v565_v13, %v564_v14  ;;  %v1409_v19 = vpack.c.bf16 %v749_v15, %v748_v33  ;;  %v926_v13 = vld [vmem:[%s2039_s7] ss:$0 sm:$0xff] }
 0x17b   :  { %1402 = vmatprep.subr.bf16.mxu1 %v1401_v1 }
 0x17c   :  { %1404 = vmatpush3.bf16.msra.mxu1 %v1874_v22  ;;  %v1412_v22 = vpack.c.bf16 %v751_v21, %v750_v20 }
 0x17d   :  { %1405 = vmatprep.subr.bf16.mxu1 %v1484_v2 }
 0x17f   :  { %724 = vmatmul.mubr.f32.vlgmr.msra.gmra.mrb[2].mxu1 %v1787_v40  ;;  %v752_v40 = vld [vmem:[%s2038_s6 + $0x30] sm:$0xff] }
 0x180   :  { %1407 = vmatpush3.bf16.msra.mxu1 %v1406_v8  ;;  %v1415_v25 = vpack.c.bf16 %v753_v24, %v752_v40  ;;  %1271 = vmatprep.mubr.msk.f32.mxu1 %vm1485_vm0, %v1486_v23 }
 0x181   :  { %1408 = vmatprep.subr.bf16.mxu1 %v1484_v2 }
 0x184   :  { %1410 = vmatpush3.bf16.msra.mxu1 %v1409_v19 }
 0x185   :  { %1411 = vmatprep.subr.bf16.mxu1 %v1484_v2 }
 0x188   :  { %1413 = vmatpush3.bf16.msra.mxu1 %v1412_v22 }
 0x189   :  { %1414 = vmatprep.subr.bf16.mxu1 %v1484_v2 }
 0x18c   :  { %1416 = vmatpush3.bf16.msra.mxu1 %v1415_v25 }
 0x18d   :  { %1417 = vmatprep.subr.bf16.mxu1 %v1484_v2 }
 0x190   :  { %1419 = vmatpush3.bf16.msra.mxu1 %v1418_v27 }
 0x191   :  { %1420 = vmatprep.subr.bf16.mxu1 %v1484_v2 }
 0x194   :  { %1422 = vmatpush3.bf16.msra.mxu1 %v1421_v32 }
 0x195   :  { %1423 = vmatprep.subr.bf16.mxu1 %v1484_v2 }
 0x198   :  { %1425 = vmatpush3.bf16.msra.mxu1 %v1424_v35 }
 0x199   :  { %1426 = vmatprep.subr.bf16.mxu1 %v1484_v2 }
 0x19c   :  { %1428 = vmatpush3.bf16.msra.mxu1 %v1427_v39 }
 0x19d   :  { %1429 = vmatprep.subr.bf16.mxu1 %v1484_v2 }
 0x19f   :  { %1272 = vmatmul.mubr.f32.vlgmr.msra.gmra.mrb[4].mxu1 %v745_v43 }
 0x1a0   :  { %1431 = vmatpush3.bf16.msra.mxu1 %v1430_v30  ;;  %1306 = vmatprep.mubr.msk.f32.mxu1 %vm1485_vm0, %v1486_v23 }
 0x1a1   :  { %1432 = vmatprep.subr.bf16.mxu1 %v1484_v2 }
 0x1a4   :  { %1434 = vmatpush3.bf16.msra.mxu1 %v1433_v48 }
 0x1a5   :  { %1435 = vmatprep.subr.bf16.mxu1 %v1484_v2 }
 0x1a8   :  { %1437 = vmatpush3.bf16.msra.mxu1 %v1436_v53 }
 0x1a9   :  { %1438 = vmatprep.subr.bf16.mxu1 %v1484_v2 }
 0x1ac   :  { %1440 = vmatpush3.bf16.msra.mxu1 %v1439_v31 }
 0x1ad   :  { %1441 = vmatprep.subr.bf16.mxu1 %v1484_v2 }
 0x1b0   :  { %1443 = vmatpush3.bf16.msra.mxu1 %v1442_v57 }
 0x1b1   :  { %1444 = vmatprep.subr.bf16.mxu1 %v1484_v2 }
 0x1b4   :  { %1446 = vmatpush3.bf16.msra.mxu1 %v1445_v61 }
 0x1b5   :  { %1447 = vmatprep.subr.bf16.mxu1 %v1484_v2 }
 0x1b8   :  { %1449 = vmatpush3.bf16.msra.mxu1 %v1448_v63 }
 0x1b9   :  { %1450 = vmatprep.subr.bf16.mxu1 %v1484_v2 }
 0x1bc   :  { %1452 = vmatpush3.bf16.msra.mxu1 %v1451_v51 }
 0x212   :  { %v1039_v4 = vpop.f32.mrb[0].mxu1 }
 0x213   :  { %v1040_v52 = vpop.f32.mrb[1].mxu1 }
 0x214   :  { %v1041_v5 = vadd.f32 %v1040_v52, %v1039_v4 }
 0x252   :  { %v1074_v6 = vpop.f32.mrb[2].mxu1 }
 0x253   :  { %v1075_v7 = vpop.f32.mrb[3].mxu1 }
 0x254   :  { %v1076_v10 = vadd.f32 %v1075_v7, %v1074_v6 }
 0x256   :  { %v726_v58 = vadd.f32 %v1076_v10, %v1041_v5 }
 0x258   :  { %1307 = vmatmul.mubr.f32.vlgmr.msra.gmra.mrb[6].mxu1 %v726_v58 }
 0x272   :  { %v828_v11 = vpop.f32.mrb[4].mxu1 }
 0x273   :  { %v1273_v59 = vpop.f32.mrb[5].mxu1 }
 0x32b   :  { %v898_v12 = vpop.f32.mrb[6].mxu1 }
 0x32c   :  { %v899_v14 = vadd.f32 %v898_v12, %v828_v11  ;;  %v1308_v1 = vpop.f32.mrb[7].mxu1 }
 0x32e   :  { %v909_v17 = vadd.f32 %v926_v13, %v899_v14 }
 0x330   :  { %910 = vst [vmem:[#allocation2] sm:$0x3] %v909_v17 }
 0x331   :  { %1470 = shalt.err (!%p1467_p4)
}
 0x332   :  { %s1471_s22 = scalar_lea.hbm %s2040_s8, 32 }
 0x333   :  { %p1472_p5 = scmp.ne.s32.totalorder %s2040_s8, %s1471_s22  ;;  %p1475_p6 = scmp.lt.u32.totalorder %s1471_s22, %s2040_s8 }
 0x335   :  { %p1477_p7 = pnand %p1475_p6, %p1472_p5 }
 0x337   :  { %1480 = shalt.err (!%p1477_p7)
}
 0x338   :  { %920 = dma.vmem_to_hbm [thread:$0]  %s918_s20, 32, %s2040_s8, [#allocation3]  }
 0x339   :  { %1481 = dma.done.wait [#allocation3], 32  }
 0x33a   :  { %1482 = vsyncadd [#allocation3], 4294967264 }
 0x33b   :  { %924 = vsyncpa [#allocation3], 1 }

</bundles_post_ra>
